<compile_context>
chip_gen: v7x
topology: tpu7x:2x2x1
jax: 0.10.0
libtpu: 0.0.40
codegen_flags: <defaults>
</compile_context>

<pallas_src>
import jax
import jax.numpy as jnp
from jax.experimental import pallas as pl
from jax.experimental.pallas import tpu as pltpu

EPS = 1e-4


# ---------------------------------------------------------------------------
# Full-slab kernel: one grid step == one batch element (moderate C == H*W).
# ---------------------------------------------------------------------------
def _cyclic_loss_full_kernel(p12_ref, p21_ref, out_ref):
    # Cast AFTER the (possibly sub-32-bit) DMA: halves HBM traffic for bf16/f16.
    p12 = p12_ref[0].astype(jnp.float32)   # (C, N) native: P[c, n] == A_nhwc[n, c]
    p21 = p21_ref[0].astype(jnp.float32)

    def _normalize_native(p):
        pc = jnp.maximum(p, EPS)
        # A.sum(dim=1) (over spatial)  == lane-axis sum of the native layout
        inv_lane = pl.reciprocal(
            jnp.maximum(jnp.sum(p, axis=1, keepdims=True), EPS), approx=False)   # (C, 1)
        # A.sum(dim=2) (over channel)  == sublane-axis sum of the native layout
        inv_sub = pl.reciprocal(
            jnp.maximum(jnp.sum(p, axis=0, keepdims=True), EPS), approx=False)   # (1, N)
        # pc > 0  =>  min(pc*a, pc*b) == pc * min(a, b): one (C,N) multiply saved.
        return pc * jnp.minimum(inv_lane, inv_sub)

    r12 = _normalize_native(p12)    # R12[c, n] == Q12[n, c]
    r21 = _normalize_native(p21)    # R21[c, n] == Q21[n, c]

    # probs[n] = sum_c Q12[n, c] * Q21[c, n] = sum_c R12[c, n] * R21.T[c, n]
    # single relative transpose (XLU) + sublane reduction -> lane-dense (1, N).
    probs = jnp.clip(jnp.sum(r12 * r21.T, axis=0, keepdims=True), 0.0, 1.0)
    # BCELoss(probs, ones) per element = -log(p), log clamped at -100 (PyTorch).
    neg_log = -jnp.maximum(jnp.log(probs), -100.0)
    out_ref[0] = jnp.sum(neg_log, axis=1, keepdims=True)        # (1, 1) per-batch partial


# ---------------------------------------------------------------------------
# Two-pass, C-tiled kernel: grid = (B, C // tile).  Cross-tile sums come in as
# small precomputed inputs; probs accumulate in a (1, N) VMEM scratch.
# ---------------------------------------------------------------------------
def _cyclic_loss_tiled_kernel(sub12_ref, lane21_ref, p12_ref, p21_ref, out_ref, probs_ref):
    t = pl.program_id(1)

    @pl.when(t == 0)
    def _():
        probs_ref[...] = jnp.zeros_like(probs_ref)

    p12t = p12_ref[0].astype(jnp.float32)   # (T, N): channels [c0, c0+T), all spatial
    p21t = p21_ref[0].astype(jnp.float32)   # (C, T): all channels, spatial [c0, c0+T)

    # Cross-tile sums precomputed in the wrapper; in-tile sums computed here.
    inv_sub12 = pl.reciprocal(jnp.maximum(sub12_ref[0], EPS), approx=False)     # (1, N)
    inv_lane21 = pl.reciprocal(jnp.maximum(lane21_ref[0], EPS), approx=False)   # (C, 1)
    inv_lane12 = pl.reciprocal(
        jnp.maximum(jnp.sum(p12t, axis=1, keepdims=True), EPS), approx=False)   # (T, 1)
    inv_sub21 = pl.reciprocal(
        jnp.maximum(jnp.sum(p21t, axis=0, keepdims=True), EPS), approx=False)   # (1, T)

    r12t = jnp.maximum(p12t, EPS) * jnp.minimum(inv_lane12, inv_sub12)   # (T, N)
    r21t = jnp.maximum(p21t, EPS) * jnp.minimum(inv_lane21, inv_sub21)   # (C, T)

    # Contribution of channels [c0, c0+T) to probs[n].
    probs_ref[...] += jnp.sum(r12t * r21t.T, axis=0, keepdims=True)      # (1, N)

    @pl.when(t == pl.num_programs(1) - 1)
    def _():
        probs = jnp.clip(probs_ref[...], 0.0, 1.0)
        neg_log = -jnp.maximum(jnp.log(probs), -100.0)
        out_ref[0] = jnp.sum(neg_log, axis=1, keepdims=True)


def _vmem_budget_bytes():
    cap = 128 * 1024 * 1024
    try:
        info = pltpu.get_tpu_info()
        cap = int(getattr(info, "vmem_capacity_bytes", cap))
    except Exception:
        pass
    headroom = max(8 * 1024 * 1024, cap // 8)   # v7x ~56 MiB budget, v5e/v6e ~112 MiB
    return max(16 * 1024 * 1024, cap - headroom)


def cyclic_loss(prob_ce12, prob_ce21, *, force_path=None, tile_c=None):
    p12_sq = jnp.squeeze(prob_ce12)
    p21_sq = jnp.squeeze(prob_ce21)
    # The PyTorch module crashes if squeeze() drops the batch dim (B == 1);
    # keep a 4-D compute view instead and return the squeezed tensors as it does.
    p12 = p12_sq if p12_sq.ndim == 4 else p12_sq[jnp.newaxis]
    p21 = p21_sq if p21_sq.ndim == 4 else p21_sq[jnp.newaxis]
    if p12.ndim != 4 or p21.ndim != 4:
        raise ValueError("CyclicLoss expects (B, C, H, W) inputs after squeeze()")
    b, c, h, w = p12.shape
    n = h * w
    if n != c:
        raise ValueError("CyclicLoss requires channel dim == H*W (cycle-correlation maps)")

    supported = (jnp.dtype(jnp.float32), jnp.dtype(jnp.bfloat16), jnp.dtype(jnp.float16))
    if jnp.dtype(p12.dtype) not in supported:
        p12 = p12.astype(jnp.float32)
        p21 = p21.astype(jnp.float32)

    # Native (B, C, H*W) layout: pure reshape (no permute -> no HBM relayout),
    # NO wrapper upcast (cast happens in-kernel after the DMA).
    p12n = p12.reshape(b, c, n)
    p21n = p21.reshape(b, c, n)
    itemsize = jnp.dtype(p12n.dtype).itemsize

    slab_src = c * n * itemsize
    slab_f32 = c * n * 4
    budget = _vmem_budget_bytes()
    # full-slab path: 2 inputs x 2 pipeline buffers + ~4 live f32 temporaries
    full_need = 4 * slab_src + 4 * slab_f32 + (2 << 20)

    if force_path is None:
        # Tiled path when the full slab can't fit, or when B is too small for the
        # (B,)-grid software pipeline to hide the input DMAs.
        use_tiled = full_need > budget or (b <= 4 and c % 128 == 0 and c >= 256)
    else:
        use_tiled = force_path == "tiled"

    if not use_tiled:
        partial = pl.pallas_call(
            _cyclic_loss_full_kernel,
            out_shape=jax.ShapeDtypeStruct((b, 1, 1), jnp.float32),
            grid_spec=pltpu.PrefetchScalarGridSpec(
                num_scalar_prefetch=0,
                grid=(b,),
                in_specs=[
                    pl.BlockSpec((1, c, n), lambda i: (i, 0, 0)),
                    pl.BlockSpec((1, c, n), lambda i: (i, 0, 0)),
                ],
                out_specs=pl.BlockSpec((1, 1, 1), lambda i: (i, 0, 0)),
            ),
            compiler_params=pltpu.CompilerParams(
                dimension_semantics=("parallel",),       # batch steps independent
                vmem_limit_bytes=int(budget),
            ),
            cost_estimate=pl.CostEstimate(
                flops=int(12 * b * c * n),
                transcendentals=int(b * (n + 2 * (c + n))),
                bytes_accessed=int(2 * b * c * n * itemsize + b * 4),
            ),
        )(p12n, p21n)
    else:
        # Pass 1: per-batch cross-tile sums (cheap XLA reduces, f32 accumulation).
        #   sub12[b, 1, n]  = sum_c P12[b, c, n]   ("sum over channel")
        #   lane21[b, c, 1] = sum_n P21[b, c, n]   ("sum over spatial")
        sub12 = jnp.sum(p12n, axis=1, keepdims=True, dtype=jnp.float32)    # (B, 1, N)
        lane21 = jnp.sum(p21n, axis=2, keepdims=True, dtype=jnp.float32)   # (B, C, 1)

        if tile_c is not None:
            tile = int(tile_c)
            if c % tile != 0:
                raise ValueError("tile_c must divide C")
        else:
            tile = None
            for cand in (512, 256, 128):
                need = 4 * cand * n * itemsize + 5 * cand * n * 4 + 8 * n * 4 + (2 << 20)
                if c % cand == 0 and need <= budget:
                    tile = cand
                    break
            if tile is None:
                # TODO(synk): ragged C-tiling (C not a multiple of 128); falls back
                # to a single full-width tile per batch.
                tile = c
        n_tiles = c // tile

        partial = pl.pallas_call(
            _cyclic_loss_tiled_kernel,
            out_shape=jax.ShapeDtypeStruct((b, 1, 1), jnp.float32),
            grid_spec=pltpu.PrefetchScalarGridSpec(
                num_scalar_prefetch=0,
                grid=(b, n_tiles),
                in_specs=[
                    pl.BlockSpec((1, 1, n), lambda i, t: (i, 0, 0)),     # sub12
                    pl.BlockSpec((1, c, 1), lambda i, t: (i, 0, 0)),     # lane21
                    pl.BlockSpec((1, tile, n), lambda i, t: (i, t, 0)),  # p12 sublane strip
                    pl.BlockSpec((1, c, tile), lambda i, t: (i, 0, t)),  # p21 lane strip
                ],
                out_specs=pl.BlockSpec((1, 1, 1), lambda i, t: (i, 0, 0)),
                scratch_shapes=[pltpu.VMEM((1, n), jnp.float32)],
            ),
            compiler_params=pltpu.CompilerParams(
                dimension_semantics=("parallel", "arbitrary"),
                vmem_limit_bytes=int(budget),
            ),
            cost_estimate=pl.CostEstimate(
                flops=int(12 * b * c * n),
                transcendentals=int(b * (n + 2 * (c + n)) + b * n_tiles * (c + n)),
                bytes_accessed=int(2 * b * c * n * itemsize + b * (c + n) * 4 + b * 4),
            ),
        )(sub12, lane21, p12n, p21n)

    loss = jnp.sum(partial) * (0.1 / (b * n))
    return loss, p12_sq, p21_sq


def cyclic_loss_ref(prob_ce12, prob_ce21):
    """Pure-JAX reference mirroring the PyTorch module (for validation)."""
    p12 = jnp.squeeze(prob_ce12).astype(jnp.float32)
    p21 = jnp.squeeze(prob_ce21).astype(jnp.float32)
    b, c, _, _ = p12.shape
    a12 = jnp.transpose(p12, (0, 2, 3, 1)).reshape(b, -1, c)
    a21 = jnp.transpose(p21, (0, 2, 3, 1)).reshape(b, -1, c)

    def norm(p):
        pc = jnp.maximum(p, EPS)
        return jnp.minimum(
            pc / jnp.maximum(jnp.sum(p, axis=1, keepdims=True), EPS),
            pc / jnp.maximum(jnp.sum(p, axis=2, keepdims=True), EPS),
        )

    a12 = norm(a12)
    a21 = norm(a21)
    probs = jnp.clip(jnp.sum(a12 * jnp.transpose(a21, (0, 2, 1)), axis=2), 0.0, 1.0)
    return jnp.mean(-jnp.maximum(jnp.log(probs), -100.0)) * 0.1


if __name__ == "__main__":
    key = jax.random.PRNGKey(0)
    k1, k2, k3, k4 = jax.random.split(key, 4)

    # Case 1: small shapes (C == H*W required): B=2, H=W=4 -> C=16.
    B, H, W = 2, 4, 4
    C = H * W
    a12 = jax.random.uniform(k1, (B, C, H, W), dtype=jnp.float32)
    a21 = jax.random.uniform(k2, (B, C, H, W), dtype=jnp.float32)
    ref1 = jax.block_until_ready(cyclic_loss_ref(a12, a21))

    loss_full, out12, out21 = cyclic_loss(a12, a21, force_path="full")
    loss_full = jax.block_until_ready(loss_full)
    assert jnp.allclose(loss_full, ref1, rtol=1e-5, atol=1e-6), (loss_full, ref1)
    assert out12.shape == a12.shape and out21.shape == a21.shape

    loss_tiled_small, _, _ = cyclic_loss(a12, a21, force_path="tiled")
    loss_tiled_small = jax.block_until_ready(loss_tiled_small)
    assert jnp.allclose(loss_tiled_small, ref1, rtol=1e-5, atol=1e-6), (loss_tiled_small, ref1)

    # Case 2: larger C == H*W == 256 exercises multi-tile accumulation (2 C-tiles).
    B2, H2, W2 = 2, 16, 16
    C2 = H2 * W2
    b12 = jax.random.uniform(k3, (B2, C2, H2, W2), dtype=jnp.float32)
    b21 = jax.random.uniform(k4, (B2, C2, H2, W2), dtype=jnp.float32)
    ref2 = jax.block_until_ready(cyclic_loss_ref(b12, b21))

    loss_tiled, _, _ = cyclic_loss(b12, b21, force_path="tiled", tile_c=128)
    loss_tiled = jax.block_until_ready(loss_tiled)
    assert jnp.allclose(loss_tiled, ref2, rtol=1e-5, atol=1e-6), (loss_tiled, ref2)

    print("KERNEL_OK")
</pallas_src>

<mosaic_0001>
module attributes {stable_mosaic.version = 11 : i64} {
  func.func @_cyclic_loss_full_kernel(%arg0: i32, %arg1: memref<1x16x16xf32, #tpu.memory_space<vmem>>, %arg2: memref<1x16x16xf32, #tpu.memory_space<vmem>>, %arg3: memref<1x1x1xf32, #tpu.memory_space<vmem>>) attributes {dimension_semantics = [#tpu.dimension_semantics<parallel>], iteration_bounds = array<i64: 2>, scalar_prefetch = 0 : i64, scratch_operands = 0 : i64, tpu.core_type = #tpu.core_type<tc>, window_params = [{transform_indices = @transform_0, window_bounds = array<i64: 1, 16, 16>}, {transform_indices = @transform_1, window_bounds = array<i64: 1, 16, 16>}, {transform_indices = @transform_2, window_bounds = array<i64: 1, 1, 1>}]} {
    %c0 = arith.constant 0 : index
    %c0_0 = arith.constant 0 : index
    %c0_1 = arith.constant 0 : index
    %0 = vector.load %arg1[%c0, %c0_0, %c0_1] : memref<1x16x16xf32, #tpu.memory_space<vmem>>, vector<1x16x16xf32>
    %1 = vector.shape_cast %0 : vector<1x16x16xf32> to vector<16x16xf32>
    %c0_2 = arith.constant 0 : index
    %c0_3 = arith.constant 0 : index
    %c0_4 = arith.constant 0 : index
    %2 = vector.load %arg2[%c0_2, %c0_3, %c0_4] : memref<1x16x16xf32, #tpu.memory_space<vmem>>, vector<1x16x16xf32>
    %3 = vector.shape_cast %2 : vector<1x16x16xf32> to vector<16x16xf32>
    %cst = arith.constant 9.99999974E-5 : f32
    %4 = vector.broadcast %cst : f32 to vector<16x16xf32>
    %5 = arith.maximumf %1, %4 : vector<16x16xf32>
    %cst_5 = arith.constant dense<0.000000e+00> : vector<16xf32>
    %6 = vector.multi_reduction <add>, %1, %cst_5 [1] : vector<16x16xf32> to vector<16xf32>
    %7 = vector.shape_cast %6 : vector<16xf32> to vector<16x1xf32>
    %cst_6 = arith.constant 9.99999974E-5 : f32
    %8 = vector.broadcast %cst_6 : f32 to vector<16x1xf32>
    %9 = arith.maximumf %7, %8 : vector<16x1xf32>
    %10 = tpu.reciprocal %9 : vector<16x1xf32> -> vector<16x1xf32>
    %cst_7 = arith.constant dense<0.000000e+00> : vector<16xf32>
    %11 = vector.multi_reduction <add>, %1, %cst_7 [0] : vector<16x16xf32> to vector<16xf32>
    %12 = vector.shape_cast %11 : vector<16xf32> to vector<1x16xf32>
    %cst_8 = arith.constant 9.99999974E-5 : f32
    %13 = vector.broadcast %cst_8 : f32 to vector<1x16xf32>
    %14 = arith.maximumf %12, %13 : vector<1x16xf32>
    %15 = tpu.reciprocal %14 : vector<1x16xf32> -> vector<1x16xf32>
    %16 = vector.broadcast %10 : vector<16x1xf32> to vector<16x16xf32>
    %17 = vector.broadcast %15 : vector<1x16xf32> to vector<16x16xf32>
    %18 = arith.minimumf %16, %17 : vector<16x16xf32>
    %19 = arith.mulf %5, %18 : vector<16x16xf32>
    %cst_9 = arith.constant 9.99999974E-5 : f32
    %20 = vector.broadcast %cst_9 : f32 to vector<16x16xf32>
    %21 = arith.maximumf %3, %20 : vector<16x16xf32>
    %cst_10 = arith.constant dense<0.000000e+00> : vector<16xf32>
    %22 = vector.multi_reduction <add>, %3, %cst_10 [1] : vector<16x16xf32> to vector<16xf32>
    %23 = vector.shape_cast %22 : vector<16xf32> to vector<16x1xf32>
    %cst_11 = arith.constant 9.99999974E-5 : f32
    %24 = vector.broadcast %cst_11 : f32 to vector<16x1xf32>
    %25 = arith.maximumf %23, %24 : vector<16x1xf32>
    %26 = tpu.reciprocal %25 : vector<16x1xf32> -> vector<16x1xf32>
    %cst_12 = arith.constant dense<0.000000e+00> : vector<16xf32>
    %27 = vector.multi_reduction <add>, %3, %cst_12 [0] : vector<16x16xf32> to vector<16xf32>
    %28 = vector.shape_cast %27 : vector<16xf32> to vector<1x16xf32>
    %cst_13 = arith.constant 9.99999974E-5 : f32
    %29 = vector.broadcast %cst_13 : f32 to vector<1x16xf32>
    %30 = arith.maximumf %28, %29 : vector<1x16xf32>
    %31 = tpu.reciprocal %30 : vector<1x16xf32> -> vector<1x16xf32>
    %32 = vector.broadcast %26 : vector<16x1xf32> to vector<16x16xf32>
    %33 = vector.broadcast %31 : vector<1x16xf32> to vector<16x16xf32>
    %34 = arith.minimumf %32, %33 : vector<16x16xf32>
    %35 = arith.mulf %21, %34 : vector<16x16xf32>
    %36 = tpu.transpose %35, [1, 0] : vector<16x16xf32> -> vector<16x16xf32>
    %37 = arith.mulf %19, %36 : vector<16x16xf32>
    %cst_14 = arith.constant dense<0.000000e+00> : vector<16xf32>
    %38 = vector.multi_reduction <add>, %37, %cst_14 [0] : vector<16x16xf32> to vector<16xf32>
    %39 = vector.shape_cast %38 : vector<16xf32> to vector<1x16xf32>
    %cst_15 = arith.constant 0.000000e+00 : f32
    %cst_16 = arith.constant 1.000000e+00 : f32
    %40 = vector.broadcast %cst_15 : f32 to vector<1x16xf32>
    %41 = arith.maximumf %40, %39 : vector<1x16xf32>
    %42 = vector.broadcast %cst_16 : f32 to vector<1x16xf32>
    %43 = arith.minimumf %42, %41 : vector<1x16xf32>
    %44 = math.log %43 : vector<1x16xf32>
    %cst_17 = arith.constant -1.000000e+02 : f32
    %45 = vector.broadcast %cst_17 : f32 to vector<1x16xf32>
    %46 = arith.maximumf %44, %45 : vector<1x16xf32>
    %cst_18 = arith.constant 0.000000e+00 : f32
    %47 = vector.broadcast %cst_18 : f32 to vector<1x16xf32>
    %48 = arith.subf %47, %46 : vector<1x16xf32>
    %cst_19 = arith.constant dense<0.000000e+00> : vector<1xf32>
    %49 = vector.multi_reduction <add>, %48, %cst_19 [1] : vector<1x16xf32> to vector<1xf32>
    %50 = vector.shape_cast %49 : vector<1xf32> to vector<1x1xf32>
    %c0_20 = arith.constant 0 : index
    %c0_21 = arith.constant 0 : index
    %c0_22 = arith.constant 0 : index
    %51 = vector.load %arg3[%c0_20, %c0_21, %c0_22] : memref<1x1x1xf32, #tpu.memory_space<vmem>>, vector<1x1x1xf32>
    %52 = vector.shape_cast %51 : vector<1x1x1xf32> to vector<1x1xf32>
    %53 = vector.shape_cast %50 : vector<1x1xf32> to vector<1x1x1xf32>
    tpu.vector_store %arg3[%c0_20, %c0_21, %c0_22], %53 {strides = array<i32>} : memref<1x1x1xf32, #tpu.memory_space<vmem>>, vector<1x1x1xf32>,
    return
  }
  func.func @transform_0(%arg0: i32) -> (i32, i32, i32) {
    %c0_i32 = arith.constant 0 : i32
    %c0_i32_0 = arith.constant 0 : i32
    %c0_i32_1 = arith.constant 0 : i32
    return %arg0, %c0_i32, %c0_i32_0 : i32, i32, i32
  }
  func.func @transform_1(%arg0: i32) -> (i32, i32, i32) {
    %c0_i32 = arith.constant 0 : i32
    %c0_i32_0 = arith.constant 0 : i32
    %c0_i32_1 = arith.constant 0 : i32
    return %arg0, %c0_i32, %c0_i32_0 : i32, i32, i32
  }
  func.func @transform_2(%arg0: i32) -> (i32, i32, i32) {
    %c0_i32 = arith.constant 0 : i32
    %c0_i32_0 = arith.constant 0 : i32
    %c0_i32_1 = arith.constant 0 : i32
    return %arg0, %c0_i32, %c0_i32_0 : i32, i32, i32
  }
}

</mosaic_0001>

<bundles_post_ra>
// kernel: tpu_custom_call.1
= control target key start
LH: loop header
LB: loop body
LE: loop exit
PB: predicated region body
PF: predicated region fallthrough
CT: control target
= control target key end

     0   :  { %7 = vsyncpa [#allocation3], 0  ;;  %s878_s0 = inlined_call_operand.hbm [shape: f32[2,16,16], index: 0, kind: input, shape index: {}]   ;;  %s879_s1 = inlined_call_operand.hbm [shape: f32[2,16,16], index: 1, kind: input, shape index: {}]   ;;  %s880_s2 = inlined_call_operand.hbm [shape: f32[2,1,1], index: 2, kind: output, shape index: {}]  }
   0x1   :  { %9 = vsyncpa [#allocation3 + $0x1], 0 }
   0x2   :  { %10 = vsyncpa [#allocation6], 0 }
   0x3   :  { %12 = vsyncpa [#allocation6 + $0x1], 0 }
   0x4   :  { %13 = vsyncpa [#allocation4], 0 }
   0x5   :  { %15 = vsyncpa [#allocation4 + $0x1], 0  ;;  %s649_s9 = smov 0   ;;  %s651_s10 = smov 0  }
   0x6   :  { %s653_s11 = smov 0   ;;  %s655_s12 = smov 0  }
   0x7 LB: > { %s670_s13 = sadd.s32 4294967295, %s627_s12   ;;  %s412_s14 = sadd.s32 4294967294, %s627_s12   ;;  %s627_s12 = sphi %s655_s12, %s896_s12   ;;  %s623_s11 = sphi %s653_s11, %s895_s11   ;;  %s619_s10 = sphi %s651_s10, %s894_s10   ;;  %s615_s9 = sphi %s649_s9, %s893_s9  }
   0x8   : > { %s674_s15 = sadd.s32 1, %s627_s12   ;;  %s28_s16 = sadd.s32 1, %s623_s11 }
   0x9   : > { %s25_s17 = ssub.s32 %s627_s12, %s674_s15  ;;  %p35_p0 = scmp.ne.s32.totalorder %s623_s11, %s619_s10 }
   0xa   : > { %p26_p1 = scmp.eq.s32.totalorder %s25_s17, 0  ;;  %p36_p2 = scmp.eq.s32.totalorder %s627_s12, 0 }
   0xb   : > { %p41_p3 = scmp.ne.s32.totalorder %s619_s10, %s615_s9  ;;  %p42_p4 = scmp.eq.s32.totalorder %s670_s13, 0 }
   0xc   : > { %s686_s18 = scalar_select %p26_p1, %s623_s11, %s28_s16  }
   0xd   : > { %p688_p5 = por %p36_p2, %p35_p0  ;;  %p692_p6 = por %p42_p4, %p41_p3 }
   0xe   : > { %p91_p7 = scmp.eq.s32.totalorder %s670_s13, 1  ;;  %p97_p8 = scmp.eq.s32.totalorder %s412_s14, 1 }
   0xf   : > { %s884_s20 = scalar_select %p692_p6, 1, 0 }
  0x10   : > { %p446_p10 = scmp.lt.s32.totalorder %s627_s12, 2  ;;  %p699_p11 = por %p91_p7, %p35_p0 }
  0x11   : > { %p703_p12 = por %p97_p8, %p41_p3  ;;  %s708_s23 = sand.u32 1, %s623_s11  }
  0x12   : > { %s885_s21 = scalar_select %p699_p11, 1, 0 }
  0x13   : > { %s886_s22 = scalar_select %p703_p12, 1, 0 }
  0x14   : > { %s427_s24 = sshll.u32 %s627_s12, 8  ;;  %s415_s25 = sshll.u32 %s708_s23, 4 }
  0x15   : > { %s717_s28 = scalar_lea.hbm %s878_s0, %s427_s24  ;;  %s121_s29 = scalar_lea.vmem [#allocation2], %s415_s25 }
  0x16   : > { %s128_s30 = sshll.u32 %s121_s29, 4  ;;  %p723_p13 = pnand %p446_p10, %p688_p5  ;;  %s727_s30 = int_to_ptr.vmem [resolvable:$true] %s128_s30 }
  0x17   : > { %s118_s4 = scalar_lea.sflag [#allocation3], %s708_s23  ;;  %s497_s5 = scalar_lea.hbm %s717_s28, 256 }
  0x18   : > { %p498_p0 = scmp.ne.s32.totalorder %s717_s28, %s497_s5  ;;  %p499_p1 = pneg %p723_p13 }
  0x19   : > { %s502_s8 = scalar_lea.hbm %s878_s0, 512  ;;  %p503_p4 = scmp.lt.u32.totalorder %s717_s28, %s878_s0 }
  0x1a   : > { %p500_p2 = pnand %p499_p1, %p498_p0  ;;  %p504_p5 = scmp.lt.u32.totalorder %s502_s8, %s497_s5 }
  0x1b   : > { %p506_p8 = scmp.lt.u32.totalorder %s497_s5, %s717_s28 }
  0x1c   : > { %p501_p3 = pneg %p500_p2  ;;  %p505_p7 = por %p504_p5, %p503_p4 }
  0x1e   : > { %p507_p10 = por %p506_p8, %p505_p7 }
  0x20   : > { %p508_p9 = pnand %p507_p10, %p501_p3 }
  0x22   : > { %511 = shalt.err (!%p508_p9)
}
  0x23   : > { %s512_s17 = scalar_lea.vmem %s727_s30, 256  ;;  %s629_s19 = smov [#allocation2]  }
  0x24   : > { %p513_p0 = scmp.ne.s32.totalorder %s727_s30, %s512_s17  ;;  %s517_s26 = sshll.u32 %s629_s19, 4  ;;  %s518_s26 = int_to_ptr.vmem [resolvable:$false] %s517_s26 }
  0x25   : > { %s519_s27 = scalar_lea.vmem %s518_s26, 512  ;;  %p520_p11 = scmp.lt.s32.totalorder %s727_s30, %s518_s26 }
  0x26   : > { %p515_p2 = pnand %p513_p0, %p499_p1  ;;  %p521_p4 = scmp.lt.s32.totalorder %s519_s27, %s512_s17 }
  0x28   : > { %p516_p12 = pneg %p515_p2  ;;  %p522_p5 = por %p521_p4, %p520_p11 }
  0x2a   : > { %p523_p7 = pnand %p522_p5, %p516_p12 }
  0x2c   : > { %526 = shalt.err (!%p523_p7)
}
  0x2d   : > { %s630_s29 = smov 128   ;;  %s631_s5 = smov 8  }
  0x2e   : > { %438 = dma.hbm_to_vmem [thread:$0]  (!%p723_p13), %s717_s28, 256, %s727_s30, %s118_s4, %s630_s29, %s630_s29, %s631_s5  }
  0x2f   : > { %p421_p9 = scmp.ge.s32.totalorder %s627_s12, 1  ;;  %p157_p11 = scmp.lt.s32.totalorder %s627_s12, 3 }
  0x30   : > { %s771_s14 = scalar_lea.hbm %s879_s1, %s427_s24  ;;  %s142_s16 = scalar_lea.vmem [#allocation5], %s415_s25 }
  0x31   : > { %p762_p12 = pnand %p421_p9, %p157_p11  ;;  %s149_s17 = sshll.u32 %s142_s16, 4  ;;  %s775_s17 = int_to_ptr.vmem [resolvable:$true] %s149_s17 }
  0x32   : > { %s139_s28 = scalar_lea.sflag [#allocation6], %s708_s23  ;;  %s527_s30 = scalar_lea.hbm %s771_s14, 256 }
  0x33   : > { %p528_p3 = scmp.ne.s32.totalorder %s771_s14, %s527_s30  ;;  %s532_s24 = scalar_lea.hbm %s879_s1, 512 }
  0x34   : > { %p533_p0 = scmp.lt.u32.totalorder %s771_s14, %s879_s1  ;;  %p534_p2 = scmp.lt.u32.totalorder %s532_s24, %s527_s30 }
  0x35   : > { %p530_p8 = pnand %p528_p3, %p499_p1  ;;  %p536_p5 = scmp.lt.u32.totalorder %s527_s30, %s771_s14 }
  0x36   : > { %p535_p4 = por %p534_p2, %p533_p0 }
  0x37   : > { %p531_p10 = pneg %p530_p8 }
  0x38   : > { %p537_p7 = por %p536_p5, %p535_p4 }
  0x3a   : > { %p538_p9 = pnand %p537_p7, %p531_p10 }
  0x3c   : > { %541 = shalt.err (!%p538_p9)
}
  0x3d   : > { %s542_s25 = scalar_lea.vmem %s775_s17, 256  ;;  %s632_s7 = smov [#allocation5]  }
  0x3e   : > { %p543_p11 = scmp.ne.s32.totalorder %s775_s17, %s542_s25  ;;  %s547_s8 = sshll.u32 %s632_s7, 4  ;;  %s548_s8 = int_to_ptr.vmem [resolvable:$false] %s547_s8 }
  0x3f   : > { %s549_s16 = scalar_lea.vmem %s548_s8, 512  ;;  %p550_p6 = scmp.lt.s32.totalorder %s775_s17, %s548_s8 }
  0x40   : > { %p545_p3 = pnand %p543_p11, %p499_p1  ;;  %p551_p0 = scmp.lt.s32.totalorder %s549_s16, %s542_s25 }
  0x42   : > { %p546_p8 = pneg %p545_p3  ;;  %p552_p2 = por %p551_p0, %p550_p6 }
  0x44   : > { %p553_p4 = pnand %p552_p2, %p546_p8 }
  0x46   : > { %556 = shalt.err (!%p553_p4)
}
  0x47   : > { %441 = dma.hbm_to_vmem [thread:$0]  (!%p723_p13), %s771_s14, 256, %s775_s17, %s139_s28, %s630_s29, %s630_s29, %s631_s5  }
  0x48   : > { %161 = sbr.rel (%p762_p12) target bundleno = 571 (0x23b), region = 28  ;;  %s809_s30 = sand.u32 (!%p762_p12), 1, %s619_s10  }
  0x49   : > { %s422_s4 = sshll.u32 (!%p762_p12), %s809_s30, 4  ;;  %s164_s19 = scalar_lea.sflag (!%p762_p12), [#allocation3], %s809_s30 }
  0x4a   : > { %s167_s3 = scalar_lea.vmem (!%p762_p12), [#allocation2], %s422_s4  ;;  %p889_p6 = scmp.ne.s32.totalorder (!%p762_p12), %s884_s20, 0 }
  0x4f   : > { %602 = dma.done.wait (%p889_p6), %s164_s19, 256  }
  0x50   : > { %604 = vsyncadd (%p889_p6), %s164_s19, 4294967040  ;;  %s173_s23 = scalar_lea.sflag [#allocation6], %s809_s30  ;;  %s176_s29 = scalar_lea.vmem [#allocation5], %s422_s4 }
  0x51   : > { %606 = dma.done.wait (%p889_p6), %s173_s23, 256  }
  0x52   : > { %608 = vsyncadd (%p889_p6), %s173_s23, 4294967040  ;;  %vm207_vm0 = vcmask 130048   ;;  %v203_v0 = vld [vmem:[%s176_s29] sm:$0xff]  ;;  %v204_v1 = vld [vmem:[%s176_s29 + $0x8] sm:$0xff]  ;;  %s424_s20 = sshll.u32 %s670_s13, 4  ;;  %s200_s5 = scalar_lea.vmem [#allocation7], %s809_s30 }
  0x53   : > { %v201_v2 = vld [vmem:[%s167_s3] sm:$0xff]  ;;  %v233_v3 = vsel %vm207_vm0, %v203_v0, 0.0  ;;  %v236_v4 = vsel %vm207_vm0, %v204_v1, 0.0  ;;  %v202_v7 = vld [vmem:[%s167_s3 + $0x8] sm:$0xff]  ;;  %v231_v34 = vmax.f32 %v203_v0, 0.0001  ;;  %s834_s28 = scalar_lea.hbm %s880_s2, %s424_s20 }
  0x54   : > { %234 = vadd.xlane.f32.xlu0 %v233_v3  ;;  %v243_v5 = vadd.f32 %v236_v4, %v233_v3  ;;  %v208_v6 = vsel %vm207_vm0, %v201_v2, 0.0  ;;  %v211_v8 = vsel %vm207_vm0, %v202_v7, 0.0  ;;  %v205_v36 = vmax.f32 %v201_v2, 0.0001  ;;  %s323_s6 = sshll.u32 %s200_s5, 4  ;;  %s311_s24 = scalar_lea.sflag [#allocation4], %s809_s30  ;;  %s836_s6 = int_to_ptr.vmem [resolvable:$true] %s323_s6 }
  0x55   : > { %209 = vadd.xlane.f32.xlu1 %v208_v6  ;;  %v218_v9 = vadd.f32 %v211_v8, %v208_v6  ;;  %v232_v40 = vmax.f32 %v204_v1, 0.0001  ;;  %v206_v43 = vmax.f32 %v202_v7, 0.0001  ;;  %vm308_vm1 = vcmask 0   ;;  %s557_s26 = scalar_lea.vmem %s836_s6, 16 }
  0x56   : > { %v244_v10 = vrot.slane %v243_v5, 4  ;;  %p558_p13 = scmp.ne.s32.totalorder %s836_s6, %s557_s26  ;;  %p890_p1 = scmp.ne.s32.totalorder %s885_s21, 0 }
  0x57   : > { %v219_v11 = vrot.slane %v218_v9, 4  ;;  %s633_s13 = smov [#allocation7]  }
  0x58   : > { %237 = vadd.xlane.f32.xlu0 %v236_v4  ;;  %v245_v12 = vadd.f32 %v244_v10, %v243_v5  ;;  %p559_p12 = pnand %p558_p13, %p890_p1  ;;  %s561_s27 = sshll.u32 %s633_s13, 4  ;;  %s562_s27 = int_to_ptr.vmem [resolvable:$false] %s561_s27 }
  0x59   : > { %212 = vadd.xlane.f32.xlu1 %v211_v8  ;;  %v220_v13 = vadd.f32 %v219_v11, %v218_v9  ;;  %s563_s25 = scalar_lea.vmem %s562_s27, 32  ;;  %p564_p5 = scmp.lt.s32.totalorder %s836_s6, %s562_s27 }
  0x5a   : > { %v246_v14 = vrot.slane %v245_v12, 2  ;;  %p560_p10 = pneg %p559_p12  ;;  %p565_p7 = scmp.lt.s32.totalorder %s563_s25, %s557_s26 }
  0x5b   : > { %v221_v15 = vrot.slane %v220_v13, 2 }
  0x5c   : > { %v247_v16 = vadd.f32 %v246_v14, %v245_v12  ;;  %p566_p9 = por %p565_p7, %p564_p5 }
  0x5d   : > { %v222_v17 = vadd.f32 %v221_v15, %v220_v13 }
  0x5e   : > { %v248_v18 = vrot.slane %v247_v16, 1  ;;  %p567_p11 = pnand %p566_p9, %p560_p10 }
  0x5f   : > { %v223_v19 = vrot.slane %v222_v17, 1 }
  0x60   : > { %v249_v20 = vadd.f32 %v248_v18, %v247_v16 }
  0x61   : > { %v224_v21 = vadd.f32 %v223_v19, %v222_v17 }
  0x62   : > { %v250_v22 = vmax.f32 %v249_v20, 0.0001 }
  0x63   : > { %v225_v23 = vmax.f32 %v224_v21, 0.0001 }
  0x64   : > { %483 = vrcp.f32 %v250_v22 }
  0x65   : > { %485 = vrcp.f32 %v225_v23 }
  0x6e   : > { %v484_v32 = vpop.eup %483 }
  0x6f   : > { %v486_v33 = vpop.eup %485 }
  0xe1   : > { %v235_v24 = vpop.xlane.xlu0 %234 }
  0xe2   : > { %v239_v25 = vmax.f32 %v235_v24, 0.0001  ;;  %v210_v26 = vpop.xlane.xlu1 %209 }
  0xe3   : > { %v214_v27 = vmax.f32 %v210_v26, 0.0001 }
  0xe4   : > { %487 = vrcp.f32 %v239_v25 }
  0xe5   : > { %v238_v28 = vpop.xlane.xlu0 %237  ;;  %489 = vrcp.f32 %v214_v27 }
  0xe6   : > { %v240_v29 = vmax.f32 %v238_v28, 0.0001  ;;  %v213_v30 = vpop.xlane.xlu1 %212 }
  0xe7   : > { %v215_v31 = vmax.f32 %v213_v30, 0.0001 }
  0xe8   : > { %491 = vrcp.f32 %v240_v29 }
  0xe9   : > { %493 = vrcp.f32 %v215_v31 }
  0xee   : > { %v488_v35 = vpop.eup %487 }
  0xef   : > { %v490_v37 = vpop.eup %489  ;;  %v252_v38 = vmin.f32 %v488_v35, %v484_v32 }
  0xf0   : > { %v227_v39 = vmin.f32 %v490_v37, %v486_v33 }
  0xf1   : > { %v254_v41 = vmul.f32 %v252_v38, %v231_v34 }
  0xf2   : > { %v492_v42 = vpop.eup %491  ;;  %v229_v44 = vmul.f32 %v227_v39, %v205_v36 }
  0xf3   : > { %v494_v45 = vpop.eup %493  ;;  %256 = vxpose.xlu0.b32.start [1/2] (short) (narrow) %v254_v41, 16  ;;  %v253_v46 = vmin.f32 %v492_v42, %v484_v32 }
  0xf4   : > { %v228_v47 = vmin.f32 %v494_v45, %v486_v33 }
  0xf5   : > { %v255_v48 = vmul.f32 %v253_v46, %v232_v40 }
  0xf6   : > { %v230_v49 = vmul.f32 %v228_v47, %v206_v43 }
  0xf7   : > { %257 = vxpose.xlu0.b32.end [2/2] (short) (narrow) %v255_v48, 16 }
 0x173   : > { %v272_v50 = vpop.trf.xlu0 }
 0x174   : > { %v288_v51 = vmul.f32 %v272_v50, %v229_v44 }
 0x176   : > { %v290_v54 = vsel %vm207_vm0, %v288_v51, 0.0 }
 0x177   : > { %v273_v52 = vpop.trf.xlu0 }
 0x178   : > { %v289_v53 = vmul.f32 %v273_v52, %v230_v49 }
 0x17a   : > { %v291_v55 = vsel %vm207_vm0, %v289_v53, 0.0 }
 0x17b   : > { %v292_v56 = vadd.f32 %v291_v55, %v290_v54 }
 0x17d   : > { %v293_v57 = vrot.slane %v292_v56, 4 }
 0x17f   : > { %v294_v58 = vadd.f32 %v293_v57, %v292_v56 }
 0x181   : > { %v295_v59 = vrot.slane %v294_v58, 2 }
 0x183   : > { %v296_v60 = vadd.f32 %v295_v59, %v294_v58 }
 0x185   : > { %v297_v61 = vrot.slane %v296_v60, 1 }
 0x187   : > { %v298_v62 = vadd.f32 %v297_v61, %v296_v60 }
 0x189   : > { %v299_v63 = vmax.f32 %v298_v62, 0.0 }
 0x18b   : > { %v300_v0 = vmin.f32 %v299_v63, 1.0 }
 0x18d   : > { %495 = vlog2.f32 %v300_v0 }
 0x197   : > { %v496_v1 = vpop.eup %495 }
 0x198   : > { %v302_v2 = vmul.f32 0.6931472, %v496_v1 }
 0x19a   : > { %v303_v3 = vmax.f32 %v302_v2, -100.0 }
 0x19c   : > { %v304_v4 = vsub.f32 0.0, %v303_v3 }
 0x19e   : > { %v305_v5 = vsel %vm207_vm0, %v304_v4, 0.0 }
 0x19f   : > { %306 = vadd.xlane.f32.xlu1 %v305_v5 }
 0x22c   : > { %v307_v6 = vpop.xlane.xlu1 %306 }
 0x22d   : > { %309 = vst.msk [vmem:[%s200_s5] sm:$0x1] %vm308_vm1, %v307_v6 }
 0x22e   : > { %570 = shalt.err (!%p567_p11)
}
 0x22f   : > { %s571_s7 = scalar_lea.hbm %s834_s28, 16  ;;  %s575_s30 = scalar_lea.hbm %s880_s2, 32 }
 0x230   : > { %p572_p3 = scmp.ne.s32.totalorder %s834_s28, %s571_s7  ;;  %p576_p2 = scmp.lt.u32.totalorder %s834_s28, %s880_s2 }
 0x231   : > { %p577_p4 = scmp.lt.u32.totalorder %s575_s30, %s571_s7  ;;  %p579_p13 = scmp.lt.u32.totalorder %s571_s7, %s834_s28 }
 0x232   : > { %p573_p8 = pnand %p572_p3, %p890_p1 }
 0x233   : > { %p578_p6 = por %p577_p4, %p576_p2 }
 0x234   : > { %p574_p0 = pneg %p573_p8 }
 0x235   : > { %p580_p12 = por %p579_p13, %p578_p6 }
 0x237   : > { %p581_p10 = pnand %p580_p12, %p574_p0 }
 0x239   : > { %584 = shalt.err (!%p581_p10)
}
 0x23a   : > { %433 = dma.vmem_to_hbm [thread:$0]  (%p890_p1), %s836_s6, 16, %s834_s28, %s311_s24  }
 0x23b PF: > { %s335_s3 = sand.u32 1, %s615_s9   ;;  %p891_p5 = scmp.ne.s32.totalorder %s886_s22, 0 }
 0x23c   : > { %p892_p7 = scmp.ge.s32.totalorder %s627_s12, 2  ;;  %s336_s23 = scalar_lea.sflag [#allocation4], %s335_s3 }
 0x23e   : > { %p443_p9 = pnand %p892_p7, %p891_p5 }
 0x240   : > { %610 = dma.done.wait (!%p443_p9), %s336_s23, 16  }
 0x241   : > { %612 = vsyncadd (!%p443_p9), %s336_s23, 4294967280  ;;  %p18_p11 = scmp.ge.s32.totalorder %s674_s15, 4   ;;  %s893_s9 = smov %s619_s10 }
 0x242   : > { %s894_s10 = smov %s623_s11  ;;  %s895_s11 = smov %s686_s18 }
 0x243   : > { %s896_s12 = smov %s674_s15  ;;  %20 = sbr.rel (!%p18_p11) target bundleno = 7 (0x7), region = 86 }
 0x24a   :  { %340 = vsyncpa [#allocation3], 1 }
 0x24b   :  { %342 = vsyncpa [#allocation3 + $0x1], 1 }
 0x24c   :  { %343 = vsyncpa [#allocation6], 1 }
 0x24d   :  { %345 = vsyncpa [#allocation6 + $0x1], 1 }
 0x24e   :  { %346 = vsyncpa [#allocation4], 1 }
 0x24f   :  { %348 = vsyncpa [#allocation4 + $0x1], 1 }

</bundles_post_ra>
